<compile_context>
chip_gen: v7x
topology: tpu7x:2x2x1
jax: 0.10.0
libtpu: 0.0.40
codegen_flags: <defaults>
</compile_context>

<pallas_src>
import functools

import jax
import jax.numpy as jnp
from jax.experimental import pallas as pl
from jax.experimental.pallas import tpu as pltpu

NPAD = 128  # lane-padded fused head width (actor logits + critic value + lse + zero padding)


def a2c_kernel(obs_ref, w_ref, b_ref, out_ref, *, actions):
    x = obs_ref[...]                                                    # [TB, D] bf16

    # Fused heads, one MXU pass (f32 accumulation): lanes 0..A-1 = logits, lane A = value.
    head = jnp.dot(x, w_ref[...], preferred_element_type=jnp.float32) + b_ref[...]

    col = jax.lax.broadcasted_iota(jnp.int32, head.shape, 1)
    is_actor = col < actions

    # Numerically-stable log_softmax over the actor lanes only; the value lane and padding
    # are masked to a large negative so they contribute 0 to the sum.
    masked = jnp.where(is_actor, head, jnp.float32(-1e30))
    m = jnp.max(masked, axis=-1, keepdims=True)
    lse = m + jnp.log(jnp.sum(jnp.exp(masked - m), axis=-1, keepdims=True))
    log_probs = head - lse

    # Pack everything into ONE lane-dense 128-wide slab (halves output HBM traffic):
    #   lanes [0, A) -> log-probs, lane A -> critic value, lane A+1 -> lse.
    packed = jnp.where(is_actor, log_probs, 0.0)
    packed = jnp.where(col == actions, head, packed)      # value lane (raw head output)
    packed = jnp.where(col == actions + 1, lse, packed)   # lse lane (logits = logp + lse)
    out_ref[...] = packed


def fuse_a2c_params(w_actor, b_actor, w_critic, b_critic):
    """Build the lane-padded fused head params ONCE (hoisted out of the per-step forward).

    w_actor: [D, A], b_actor: [A], w_critic: [D, 1], b_critic: [1]."""
    D, A = w_actor.shape
    assert A + 2 <= NPAD, "actor dim + value lane + lse lane must fit in one 128-lane slab"
    w = jnp.zeros((D, NPAD), jnp.float32)
    w = w.at[:, :A].set(w_actor.astype(jnp.float32))
    w = w.at[:, A:A + 1].set(w_critic.astype(jnp.float32))
    b = jnp.zeros((1, NPAD), jnp.float32)
    b = b.at[0, :A].set(b_actor.astype(jnp.float32))
    b = b.at[0, A].set(b_critic.astype(jnp.float32)[0])
    # Weights feed the MXU in bf16 (accumulation stays f32 in-kernel); bias stays f32.
    return w.astype(jnp.bfloat16), b


def _round_up(x, m):
    return ((x + m - 1) // m) * m


def _batch_tile(B, D, block_b):
    """Batch tile: multiple of 16 (bf16 (16,128) tile), VMEM-capped, v7x-megacore aware."""
    b_pad = _round_up(B, 16)
    # Double-buffered obs (bf16) + out (f32) tiles; keep ~8 MiB so full double-buffering
    # fits comfortably even under v7x's 32 MiB default scoped VMEM.
    bytes_per_row = 2 * (D * 2 + NPAD * 4)
    vmem_cap = max(16, (((8 << 20) // bytes_per_row) // 16) * 16)
    tb = min(block_b, vmem_cap, b_pad)
    if b_pad >= 32:
        # Guarantee >= 2 grid steps so the parallel batch axis shards across v7x's 2 TCs.
        tb = min(tb, max(16, _round_up(pl.cdiv(B, 2), 16)))
    return tb


@functools.partial(jax.jit, static_argnames=("actions", "block_b"))
def a2c_forward(obs, w_fused, b_fused, *, actions, block_b=4096):
    """obs: [B, D] (already the `model` features); fused params from fuse_a2c_params.

    Returns (logits [B, A], log_probs [B, A], value [B])."""
    B, D = obs.shape
    tb = _batch_tile(B, D, block_b)

    slab = pl.pallas_call(
        functools.partial(a2c_kernel, actions=actions),
        out_shape=jax.ShapeDtypeStruct((B, NPAD), jnp.float32),
        grid_spec=pltpu.PrefetchScalarGridSpec(
            num_scalar_prefetch=0,
            grid=(pl.cdiv(B, tb),),
            in_specs=[
                pl.BlockSpec((tb, D), lambda i: (i, 0)),    # obs tile (pipelined over B)
                # Constant index_map -> weights/bias stay resident in VMEM across the grid.
                # TODO(synk): for very large D, add pipeline_mode=pl.Buffered(1) here to
                # drop the unused second buffer copy of the resident weights.
                pl.BlockSpec((D, NPAD), lambda i: (0, 0)),  # fused weights [D, 128] (bf16)
                pl.BlockSpec((1, NPAD), lambda i: (0, 0)),  # fused bias row [1, 128] (f32)
            ],
            out_specs=pl.BlockSpec((tb, NPAD), lambda i: (i, 0)),
        ),
        compiler_params=pltpu.CompilerParams(
            dimension_semantics=("parallel",),
        ),
    )(obs.astype(jnp.bfloat16), w_fused, b_fused)

    # Slices are consumed inside this jit so they fuse into one pass over the slab
    # (no standalone strided out[:, A] gather from HBM).
    log_probs = slab[:, :actions]
    value = slab[:, actions]
    lse = slab[:, actions + 1:actions + 2]
    logits = log_probs + lse
    return logits, log_probs, value


def _init_linear(key, in_dim, out_dim):
    """Deterministic init matching nn.Linear's U(-1/sqrt(in), 1/sqrt(in)); weight stored [in, out]."""
    kw, kb = jax.random.split(key)
    bound = 1.0 / jnp.sqrt(jnp.float32(in_dim))
    w = jax.random.uniform(kw, (in_dim, out_dim), jnp.float32, -bound, bound)
    b = jax.random.uniform(kb, (out_dim,), jnp.float32, -bound, bound)
    return w, b


if __name__ == "__main__":
    key = jax.random.PRNGKey(0)
    k_obs, k_actor, k_critic = jax.random.split(key, 3)

    B, in_dim, actions = 8, 32, 16

    # `model` is an external feature extractor in the PyTorch module; identity here,
    # so obs already has shape [B, in_dim].
    obs = jax.random.normal(k_obs, (B, in_dim), jnp.float32)
    w_actor, b_actor = _init_linear(k_actor, in_dim, actions)
    w_critic, b_critic = _init_linear(k_critic, in_dim, 1)

    # Built once at parameter-creation time (not inside the per-step forward).
    w_fused, b_fused = fuse_a2c_params(w_actor, b_actor, w_critic, b_critic)

    logits, log_probs, value = a2c_forward(obs, w_fused, b_fused, actions=actions)
    jax.block_until_ready((logits, log_probs, value))

    # Correctness check against a pure-JAX reference of the same forward pass.
    # Inputs are rounded to bf16 to match the kernel's MXU input precision (accumulation
    # is f32 in both paths), so the tolerance can stay tight.
    obs_r = obs.astype(jnp.bfloat16).astype(jnp.float32)
    w_a_r = w_actor.astype(jnp.bfloat16).astype(jnp.float32)
    w_c_r = w_critic.astype(jnp.bfloat16).astype(jnp.float32)
    ref_logits = obs_r @ w_a_r + b_actor
    ref_logp = jax.nn.log_softmax(ref_logits, axis=-1)
    ref_value = (obs_r @ w_c_r + b_critic)[:, 0]
    assert jnp.allclose(logits, ref_logits, atol=1e-3), float(jnp.max(jnp.abs(logits - ref_logits)))
    assert jnp.allclose(log_probs, ref_logp, atol=1e-3), float(jnp.max(jnp.abs(log_probs - ref_logp)))
    assert jnp.allclose(value, ref_value, atol=1e-3), float(jnp.max(jnp.abs(value - ref_value)))

    print("KERNEL_OK")
</pallas_src>

<mosaic_0001>
module attributes {stable_mosaic.version = 11 : i64} {
  func.func @a2c_kernel(%arg0: i32, %arg1: memref<16x32xbf16, #tpu.memory_space<vmem>>, %arg2: memref<32x128xbf16, #tpu.memory_space<vmem>>, %arg3: memref<1x128xf32, #tpu.memory_space<vmem>>, %arg4: memref<16x128xf32, #tpu.memory_space<vmem>>) attributes {dimension_semantics = [#tpu.dimension_semantics<parallel>], iteration_bounds = array<i64: 1>, scalar_prefetch = 0 : i64, scratch_operands = 0 : i64, tpu.core_type = #tpu.core_type<tc>, window_params = [{transform_indices = @transform_0, window_bounds = array<i64: 16, 32>}, {pipeline_mode = #tpu.pipeline_mode<synchronous>, transform_indices = @transform_1, window_bounds = array<i64: 32, 128>}, {pipeline_mode = #tpu.pipeline_mode<synchronous>, transform_indices = @transform_2, window_bounds = array<i64: 1, 128>}, {transform_indices = @transform_3, window_bounds = array<i64: 16, 128>}]} {
    %c0 = arith.constant 0 : index
    %c0_0 = arith.constant 0 : index
    %0 = vector.load %arg1[%c0, %c0_0] : memref<16x32xbf16, #tpu.memory_space<vmem>>, vector<16x32xbf16>
    %c0_1 = arith.constant 0 : index
    %c0_2 = arith.constant 0 : index
    %1 = vector.load %arg2[%c0_1, %c0_2] : memref<32x128xbf16, #tpu.memory_space<vmem>>, vector<32x128xbf16>
    %cst = arith.constant dense<0.000000e+00> : vector<16x128xf32>
    %2 = tpu.matmul %0, %1, %cst {dimension_numbers = #tpu.dot_dimension_numbers<[1], [0], [0], [1], [0, 0, 1, 1], [], []>} : vector<16x32xbf16>, vector<32x128xbf16>, vector<16x128xf32> -> vector<16x128xf32>
    %c0_3 = arith.constant 0 : index
    %c0_4 = arith.constant 0 : index
    %3 = vector.load %arg3[%c0_3, %c0_4] : memref<1x128xf32, #tpu.memory_space<vmem>>, vector<1x128xf32>
    %4 = vector.broadcast %3 : vector<1x128xf32> to vector<16x128xf32>
    %5 = arith.addf %2, %4 : vector<16x128xf32>
    %6 = tpu.iota {dimensions = array<i32: 1>} : vector<16x128xi32>
    %c16_i32 = arith.constant 16 : i32
    %7 = vector.broadcast %c16_i32 : i32 to vector<16x128xi32>
    %8 = arith.cmpi slt, %6, %7 : vector<16x128xi32>
    %cst_5 = arith.constant -1.000000e+30 : f32
    %9 = vector.broadcast %cst_5 : f32 to vector<16x128xf32>
    %10 = arith.select %8, %5, %9 : vector<16x128xi1>, vector<16x128xf32>
    %cst_6 = arith.constant dense<0xFF800000> : vector<16xf32>
    %11 = vector.multi_reduction <maximumf>, %10, %cst_6 [1] : vector<16x128xf32> to vector<16xf32>
    %12 = vector.shape_cast %11 : vector<16xf32> to vector<16x1xf32>
    %13 = vector.broadcast %12 : vector<16x1xf32> to vector<16x128xf32>
    %14 = arith.subf %10, %13 : vector<16x128xf32>
    %15 = math.exp %14 : vector<16x128xf32>
    %cst_7 = arith.constant dense<0.000000e+00> : vector<16xf32>
    %16 = vector.multi_reduction <add>, %15, %cst_7 [1] : vector<16x128xf32> to vector<16xf32>
    %17 = vector.shape_cast %16 : vector<16xf32> to vector<16x1xf32>
    %18 = math.log %17 : vector<16x1xf32>
    %19 = arith.addf %12, %18 : vector<16x1xf32>
    %20 = vector.broadcast %19 : vector<16x1xf32> to vector<16x128xf32>
    %21 = arith.subf %5, %20 : vector<16x128xf32>
    %cst_8 = arith.constant 0.000000e+00 : f32
    %22 = vector.broadcast %cst_8 : f32 to vector<16x128xf32>
    %23 = arith.select %8, %21, %22 : vector<16x128xi1>, vector<16x128xf32>
    %c16_i32_9 = arith.constant 16 : i32
    %24 = vector.broadcast %c16_i32_9 : i32 to vector<16x128xi32>
    %25 = arith.cmpi eq, %6, %24 : vector<16x128xi32>
    %26 = arith.select %25, %5, %23 : vector<16x128xi1>, vector<16x128xf32>
    %c17_i32 = arith.constant 17 : i32
    %27 = vector.broadcast %c17_i32 : i32 to vector<16x128xi32>
    %28 = arith.cmpi eq, %6, %27 : vector<16x128xi32>
    %29 = vector.shape_cast %19 : vector<16x1xf32> to vector<16x1xf32>
    %30 = vector.broadcast %29 : vector<16x1xf32> to vector<16x128xf32>
    %31 = arith.select %28, %30, %26 : vector<16x128xi1>, vector<16x128xf32>
    %c0_10 = arith.constant 0 : index
    %c0_11 = arith.constant 0 : index
    %32 = vector.load %arg4[%c0_10, %c0_11] : memref<16x128xf32, #tpu.memory_space<vmem>>, vector<16x128xf32>
    tpu.vector_store %arg4[%c0_10, %c0_11], %31 {strides = array<i32>} : memref<16x128xf32, #tpu.memory_space<vmem>>, vector<16x128xf32>,
    return
  }
  func.func @transform_0(%arg0: i32) -> (i32, i32) {
    %c0_i32 = arith.constant 0 : i32
    %c0_i32_0 = arith.constant 0 : i32
    return %arg0, %c0_i32 : i32, i32
  }
  func.func @transform_1(%arg0: i32) -> (i32, i32) {
    %c0_i32 = arith.constant 0 : i32
    %c0_i32_0 = arith.constant 0 : i32
    %c0_i32_1 = arith.constant 0 : i32
    return %c0_i32, %c0_i32_0 : i32, i32
  }
  func.func @transform_2(%arg0: i32) -> (i32, i32) {
    %c0_i32 = arith.constant 0 : i32
    %c0_i32_0 = arith.constant 0 : i32
    %c0_i32_1 = arith.constant 0 : i32
    return %c0_i32, %c0_i32_0 : i32, i32
  }
  func.func @transform_3(%arg0: i32) -> (i32, i32) {
    %c0_i32 = arith.constant 0 : i32
    %c0_i32_0 = arith.constant 0 : i32
    return %arg0, %c0_i32 : i32, i32
  }
}

</mosaic_0001>

<bundles_post_ra>
// kernel: a2c_forward.1
= control target key start
LH: loop header
LB: loop body
LE: loop exit
PB: predicated region body
PF: predicated region fallthrough
CT: control target
= control target key end

     0   :  { %8 = vsyncpa [#allocation3], 0  ;;  %s234_s12 = smov [#allocation2]   ;;  %s282_s0 = inlined_call_operand.vmem [shape: bf16[8,32], index: 0, kind: input, shape index: {}]   ;;  %s283_s1 = inlined_call_operand.hbm [shape: bf16[32,128], index: 1, kind: input, shape index: {}]   ;;  %s284_s2 = inlined_call_operand.vmem [shape: f32[1,128], index: 2, kind: input, shape index: {}]   ;;  %s285_s3 = inlined_call_operand.vmem [shape: f32[8,128], index: 3, kind: output, shape index: {}]  }
   0x1   :  { %s16_s13 = sshll.u32 %s234_s12, 4  ;;  %s210_s16 = scalar_lea.hbm %s283_s1, 256  ;;  %s17_s13 = int_to_ptr.vmem [resolvable:$true] %s16_s13 }
   0x2   :  { %p211_p0 = scmp.ne.s32.totalorder %s283_s1, %s210_s16  ;;  %p214_p1 = scmp.lt.u32.totalorder %s210_s16, %s283_s1 }
   0x4   :  { %p216_p2 = pnand %p214_p1, %p211_p0 }
   0x6   :  { %219 = shalt.err (!%p216_p2)
}
   0x7   :  { %s220_s21 = scalar_lea.vmem %s17_s13, 256  ;;  %p225_p4 = scmp.lt.s32.totalorder %s17_s13, %s17_s13 }
   0x8   :  { %p221_p3 = scmp.ne.s32.totalorder %s17_s13, %s220_s21  ;;  %p226_p5 = scmp.lt.s32.totalorder %s220_s21, %s220_s21 }
   0xa   :  { %p227_p6 = por %p226_p5, %p225_p4 }
   0xc   :  { %p228_p7 = pnand %p227_p6, %p221_p3 }
   0xe   :  { %231 = shalt.err (!%p228_p7)
}
   0xf   :  { %s235_s22 = smov 64   ;;  %s236_s23 = smov 4  }
  0x10   :  { %22 = dma.hbm_to_vmem [thread:$0]  %s283_s1, 256, %s17_s13, [#allocation3], %s235_s22, %s235_s22, %s236_s23  }
  0x11   :  { %232 = dma.done.wait [#allocation3], 256  }
  0x12   :  { %233 = vsyncadd [#allocation3], 4294967040  ;;  %v237_v0 = vmov 0.0   ;;  %vm238_vm0 = vmmov 0   ;;  %v203_v1 = vld [vmem:[#allocation2] sm:$0xff]   ;;  %v204_v2 = vld [vmem:[#allocation2 + $0x8] sm:$0xff]   ;;  %v104_v4 = vlaneseq }
  0x13   :  { %190 = vmatprep.subr.bf16.mxu0 %v237_v0  ;;  %194 = vmatprep.mubr.msk.bf16.mxu0 %vm238_vm0, %v237_v0  ;;  %v205_v3 = vld [vmem:[%s282_s0] sm:$0xff]   ;;  %vm59_vm1 = vcmask 261120  }
  0x14   :  { %191 = vmatpush3.bf16.msra.mxu0 %v203_v1  ;;  %v105_v5 = vand.u32 127, %v104_v4  ;;  %v182_v6 = vld [vmem:[%s284_s2] ss:$0 sm:$0xff] }
  0x15   :  { %192 = vmatprep.subr.bf16.mxu0 %v237_v0 }
  0x16   :  { %vm106_vm2 = vcmp.lt.s32.totalorder %v105_v5, 16  ;;  %vm133_vm3 = vcmp.eq.s32.totalorder %v105_v5, 16  ;;  %vm136_vm4 = vcmp.eq.s32.totalorder %v105_v5, 17 }
  0x18   :  { %193 = vmatpush3.bf16.msra.mxu0 %v204_v2 }
  0x1b   :  { %195 = vmatmul.mubr.msk.bf16.vlgmr.msra.gmra.mrb[0].mxu0 %vm59_vm1, %v205_v3 }
  0xee   :  { %v97_v7 = vpop.f32.mrb[0].mxu0 }
  0xef   :  { %v98_v8 = vadd.f32 %v182_v6, %v97_v7  ;;  %v196_v9 = vpop.f32.mrb[1].mxu0 }
  0xf0   :  { %v100_v10 = vpop.f32.mrb[2].mxu0 }
  0xf1   :  { %v197_v11 = vpop.f32.mrb[3].mxu0  ;;  %v107_v12 = vsel %vm106_vm2, %v98_v8, -1e+30 }
  0xf2   :  { %109 = vmax.xlane.f32.xlu0 %v107_v12 }
 0x17f   :  { %v110_v13 = vpop.xlane.xlu0 %109 }
 0x180   :  { %v113_v14 = vsub.f32 %v107_v12, %v110_v13 }
 0x182   :  { %v115_v15 = vmul.f32 1.442695, %v113_v14 }
 0x184   :  { %206 = vpow2.f32 %v115_v15 }
 0x18e   :  { %v207_v16 = vpop.eup %206 }
 0x18f   :  { %119 = vadd.xlane.f32.xlu0 %v207_v16 }
 0x21c   :  { %v120_v17 = vpop.xlane.xlu0 %119 }
 0x21d   :  { %208 = vlog2.f32 %v120_v17 }
 0x227   :  { %v209_v18 = vpop.eup %208 }
 0x228   :  { %v124_v19 = vmul.f32 0.6931472, %v209_v18 }
 0x22a   :  { %v127_v20 = vadd.f32 %v124_v19, %v110_v13 }
 0x22c   :  { %v129_v21 = vsub.f32 %v98_v8, %v127_v20 }
 0x22e   :  { %v131_v22 = vsel %vm106_vm2, %v129_v21, 0.0 }
 0x22f   :  { %v134_v23 = vsel %vm133_vm3, %v98_v8, %v131_v22 }
 0x230   :  { %v137_v24 = vsel %vm136_vm4, %v127_v20, %v134_v23 }
 0x231   :  { %171 = vst [vmem:[%s285_s3] sm:$0xff] %v137_v24 }
 0x232   :  { %177 = vsyncpa [#allocation3], 1 }

</bundles_post_ra>
